<compile_context>
chip_gen: v7x
topology: tpu7x:2x2x1
jax: 0.10.0
libtpu: 0.0.40
codegen_flags: <defaults>
</compile_context>

<pallas_src>
import functools

import jax
import jax.numpy as jnp
from jax.experimental import pallas as pl
from jax.experimental.pallas import tpu as pltpu


def _round_up(x, m):
    return ((x + m - 1) // m) * m


def _param_layout(input_size, hidden_dim):
    """Row offsets of each parameter inside the packed (rows, 4H) slab.

    Every section starts on an 8-row (sublane-tile) boundary so in-kernel static
    slices never sit at an unaligned sublane offset.
    """
    off_ih = 0
    off_hh = off_ih + _round_up(input_size, 8)
    off_b = off_hh + _round_up(hidden_dim, 8)
    off_wo = off_b + 8
    off_bo = off_wo + 8
    rows = off_bo + 8
    return off_ih, off_hh, off_b, off_wo, off_bo, rows


def pack_params(w_ih, w_hh, b_ih, b_hh, w_o, b_o):
    """Pack all LSTMpred parameters (PyTorch layouts) into one (rows, 4H) f32 slab.

    One slab == one HBM->VMEM DMA for all five parameter tensors, instead of five
    sub-KiB transfers whose fixed per-DMA cost dominates at these sizes.
    """
    four_h, input_size = w_ih.shape
    hidden_dim = w_hh.shape[1]
    assert four_h == 4 * hidden_dim
    off_ih, off_hh, off_b, off_wo, off_bo, rows = _param_layout(input_size, hidden_dim)

    slab = jnp.zeros((rows, 4 * hidden_dim), jnp.float32)
    slab = slab.at[off_ih:off_ih + input_size, :].set(w_ih.T)      # W_ih^T   (D, 4H)
    slab = slab.at[off_hh:off_hh + hidden_dim, :].set(w_hh.T)      # W_hh^T   (H, 4H)
    slab = slab.at[off_b, :].set(b_ih + b_hh)                      # gate bias (4H,)
    slab = slab.at[off_wo, 0:hidden_dim].set(w_o[0])               # hidden2out weight (H,)
    slab = slab.at[off_bo, 0].set(b_o[0])                          # hidden2out bias ()
    return slab


def _lstm_kernel(seq_ref, params_ref, state_ref, out_ref, state_out_ref, *,
                 seq_len, input_size, hidden_dim):
    T, D, H = seq_len, input_size, hidden_dim
    off_ih, off_hh, off_b, off_wo, off_bo, _ = _param_layout(D, H)

    # Parameter loads: static, 8-aligned row slices of the packed slab.
    wih = params_ref[off_ih:off_ih + D, :]                 # (D, 4H)
    whh = params_ref[off_hh:off_hh + H, :]                 # (H, 4H) -- stays live across steps
    b_gates = params_ref[off_b:off_b + 1, :]               # (1, 4H)
    wout = params_ref[off_wo:off_wo + 1, :][:, 0:H]        # (1, H)
    bout = params_ref[off_bo:off_bo + 1, :][:, 0:1]        # (1, 1)

    # ---- Prologue (off the serial chain) -------------------------------------
    # Input projection for all timesteps at once, kept in registers (one f32 vreg
    # at T=8, 4H=128) -- no VMEM scratch store / per-step masked row reloads.
    xg = jnp.dot(seq_ref[...], wih, preferred_element_type=jnp.float32) + b_gates

    # Per-lane scale so ONE tanh pass yields both sigmoid (i, f, o) and tanh (g):
    #   sigmoid(x) = 0.5 * (1 + tanh(0.5 * x))
    # Cuts serialized EUP pushes per step from 4 (exp + recip + 2x tanh) to 2.
    lane = jax.lax.broadcasted_iota(jnp.int32, (1, 4 * H), 1)
    is_g_gate = (lane >= 2 * H) & (lane < 3 * H)
    gate_scale = jnp.where(is_g_gate, 1.0, 0.5)            # (1, 4H), hoisted

    h = state_ref[0:1, :]                                  # (1, H) initial hidden
    c = state_ref[1:2, :]                                  # (1, H) initial cell

    # ---- Serial recurrence: fully unrolled (static indices, zero per-step stores).
    # Only h @ W_hh + the two tanh passes sit on the latency-critical chain.
    # TODO(synk): for large T, switch to lax.fori_loop(unroll=8) with xg / h-history in
    #             T-tiled VMEM scratch (pl.Buffered pipelining) instead of full unroll.
    h_rows = []
    for t in range(T):
        # TODO(synk): benchmark staged-RHS MXU driving (pltpu.matmul_push_rhs holding
        #             W_hh across steps) / a VPU+XLU formulation against this per-step dot.
        gates = xg[t:t + 1, :] + jnp.dot(h, whh, preferred_element_type=jnp.float32)
        t_all = jnp.tanh(gates * gate_scale)               # single EUP pass over (1, 4H)
        i_g = 0.5 * (1.0 + t_all[:, 0 * H:1 * H])
        f_g = 0.5 * (1.0 + t_all[:, 1 * H:2 * H])
        g_g = t_all[:, 2 * H:3 * H]
        o_g = 0.5 * (1.0 + t_all[:, 3 * H:4 * H])
        c = f_g * c + i_g * g_g
        h = o_g * jnp.tanh(c)                              # second (and last) EUP pass
        h_rows.append(h)

    # ---- Epilogue: hidden2out as a VPU multiply + lane reduce (keeps this 256-FLOP
    # projection off the MXU and avoids per-step masked stores); single writeback each.
    h_all = jnp.concatenate(h_rows, axis=0)                # (T, H)
    out_ref[...] = jnp.sum(h_all * wout, axis=1, keepdims=True) + bout
    state_out_ref[...] = jnp.concatenate([h, c], axis=0)   # final (h_T; c_T)


def lstm_pred_forward(seq, params, state):
    """seq: (T, D) f32; params: slab from pack_params; state: (2, H) f32 = [h0; c0].

    Returns (outdat (T, 1) f32, new_state (2, H) f32) -- matching LSTMpred.forward,
    which consumes self.hidden and updates it alongside producing outdat.
    """
    T, input_size = seq.shape
    hidden_dim = state.shape[1]
    *_, rows = _param_layout(input_size, hidden_dim)
    assert params.shape == (rows, 4 * hidden_dim)
    assert state.shape == (2, hidden_dim)

    kernel = functools.partial(_lstm_kernel, seq_len=T, input_size=input_size,
                               hidden_dim=hidden_dim)
    vmem = pltpu.MemorySpace.VMEM

    # Explicit VMEM budget guard for the fully-resident design (tens of KiB here);
    # large-T/H reuse should trip this loudly rather than silently exceed v7x's 64 MiB.
    footprint_bytes = 4 * (seq.size + params.size + state.size + T + 2 * hidden_dim)
    vmem_limit = max(4 * 1024 * 1024, 4 * footprint_bytes)

    return pl.pallas_call(
        kernel,
        out_shape=(jax.ShapeDtypeStruct((T, 1), jnp.float32),
                   jax.ShapeDtypeStruct((2, hidden_dim), jnp.float32)),
        in_specs=[
            pl.BlockSpec(memory_space=vmem),   # seq            (T, D)
            pl.BlockSpec(memory_space=vmem),   # packed params  (rows, 4H)
            pl.BlockSpec(memory_space=vmem),   # state          (2, H)
        ],
        out_specs=(pl.BlockSpec(memory_space=vmem),
                   pl.BlockSpec(memory_space=vmem)),
        compiler_params=pltpu.CompilerParams(vmem_limit_bytes=vmem_limit),
    )(seq, params, state)


def _reference_forward(seq, w_ih, w_hh, b_ih, b_hh, w_o, b_o, h0, c0):
    """Pure-JAX reference with PyTorch LSTM semantics (gate order i, f, g, o)."""
    H = w_hh.shape[1]
    w_ih_t, w_hh_t = w_ih.T, w_hh.T
    b = (b_ih + b_hh)[None, :]

    def step(carry, x_t):
        h, c = carry
        gates = x_t[None, :] @ w_ih_t + h @ w_hh_t + b
        i = jax.nn.sigmoid(gates[:, 0 * H:1 * H])
        f = jax.nn.sigmoid(gates[:, 1 * H:2 * H])
        g = jnp.tanh(gates[:, 2 * H:3 * H])
        o = jax.nn.sigmoid(gates[:, 3 * H:4 * H])
        c_new = f * c + i * g
        h_new = o * jnp.tanh(c_new)
        out = h_new @ w_o.T + b_o[None, :]
        return (h_new, c_new), out[0]

    (h_t, c_t), outs = jax.lax.scan(step, (h0, c0), seq)
    return outs, (h_t, c_t)


if __name__ == "__main__":
    # Small shapes consistent with the module: T=8 timesteps, input_size=4, hidden_dim=32.
    T, input_size, hidden_dim = 8, 4, 32

    key = jax.random.PRNGKey(0)
    k_seq, k_wih, k_whh, k_bih, k_bhh, k_wo, k_bo = jax.random.split(key, 7)

    # Deterministic init, uniform(-1/sqrt(H), 1/sqrt(H)) like nn.LSTM / nn.Linear.
    bound = 1.0 / jnp.sqrt(jnp.float32(hidden_dim))
    seq = jax.random.normal(k_seq, (T, input_size), jnp.float32)
    w_ih = jax.random.uniform(k_wih, (4 * hidden_dim, input_size), jnp.float32, -bound, bound)
    w_hh = jax.random.uniform(k_whh, (4 * hidden_dim, hidden_dim), jnp.float32, -bound, bound)
    b_ih = jax.random.uniform(k_bih, (4 * hidden_dim,), jnp.float32, -bound, bound)
    b_hh = jax.random.uniform(k_bhh, (4 * hidden_dim,), jnp.float32, -bound, bound)
    w_o = jax.random.uniform(k_wo, (1, hidden_dim), jnp.float32, -bound, bound)
    b_o = jax.random.uniform(k_bo, (1,), jnp.float32, -bound, bound)

    params = pack_params(w_ih, w_hh, b_ih, b_hh, w_o, b_o)
    state0 = jnp.zeros((2, hidden_dim), jnp.float32)   # init_hidden(): zero (h, c)

    out, state1 = lstm_pred_forward(seq, params, state0)
    out, state1 = jax.block_until_ready((out, state1))

    ref_out, (ref_h, ref_c) = _reference_forward(
        seq, w_ih, w_hh, b_ih, b_hh, w_o, b_o,
        jnp.zeros((1, hidden_dim), jnp.float32),
        jnp.zeros((1, hidden_dim), jnp.float32))

    assert out.shape == (T, 1)
    assert jnp.allclose(out, ref_out, atol=5e-5, rtol=1e-5), "output mismatch vs JAX reference"
    assert jnp.allclose(state1[0:1], ref_h, atol=5e-5, rtol=1e-5), "h_T mismatch vs JAX reference"
    assert jnp.allclose(state1[1:2], ref_c, atol=5e-5, rtol=1e-5), "c_T mismatch vs JAX reference"
    print("KERNEL_OK")
</pallas_src>

<mosaic_0001>
module attributes {stable_mosaic.version = 11 : i64} {
  func.func @_lstm_kernel(%arg0: memref<8x4xf32, #tpu.memory_space<vmem>>, %arg1: memref<64x128xf32, #tpu.memory_space<vmem>>, %arg2: memref<2x32xf32, #tpu.memory_space<vmem>>, %arg3: memref<8x1xf32, #tpu.memory_space<vmem>>, %arg4: memref<2x32xf32, #tpu.memory_space<vmem>>) attributes {dimension_semantics = [], scalar_prefetch = 0 : i64, scratch_operands = 0 : i64, tpu.core_type = #tpu.core_type<tc>} {
    %c0 = arith.constant 0 : index
    %c0_0 = arith.constant 0 : index
    %0 = vector.load %arg1[%c0, %c0_0] : memref<64x128xf32, #tpu.memory_space<vmem>>, vector<4x128xf32>
    %c8 = arith.constant 8 : index
    %c0_1 = arith.constant 0 : index
    %1 = vector.load %arg1[%c8, %c0_1] : memref<64x128xf32, #tpu.memory_space<vmem>>, vector<32x128xf32>
    %c40 = arith.constant 40 : index
    %c0_2 = arith.constant 0 : index
    %2 = vector.load %arg1[%c40, %c0_2] : memref<64x128xf32, #tpu.memory_space<vmem>>, vector<1x128xf32>
    %c48 = arith.constant 48 : index
    %c0_3 = arith.constant 0 : index
    %3 = vector.load %arg1[%c48, %c0_3] : memref<64x128xf32, #tpu.memory_space<vmem>>, vector<1x128xf32>
    %4 = vector.extract_strided_slice %3 {offsets = [0, 0], sizes = [1, 32], strides = [1, 1]} : vector<1x128xf32> to vector<1x32xf32>
    %c56 = arith.constant 56 : index
    %c0_4 = arith.constant 0 : index
    %5 = vector.load %arg1[%c56, %c0_4] : memref<64x128xf32, #tpu.memory_space<vmem>>, vector<1x128xf32>
    %6 = vector.extract_strided_slice %5 {offsets = [0, 0], sizes = [1, 1], strides = [1, 1]} : vector<1x128xf32> to vector<1x1xf32>
    %c0_5 = arith.constant 0 : index
    %c0_6 = arith.constant 0 : index
    %7 = vector.load %arg0[%c0_5, %c0_6] : memref<8x4xf32, #tpu.memory_space<vmem>>, vector<8x4xf32>
    %cst = arith.constant dense<0.000000e+00> : vector<8x128xf32>
    %8 = tpu.matmul %7, %0, %cst {dimension_numbers = #tpu.dot_dimension_numbers<[1], [0], [0], [1], [0, 0, 1, 1], [], []>} : vector<8x4xf32>, vector<4x128xf32>, vector<8x128xf32> -> vector<8x128xf32>
    %9 = vector.broadcast %2 : vector<1x128xf32> to vector<8x128xf32>
    %10 = arith.addf %8, %9 : vector<8x128xf32>
    %11 = tpu.iota {dimensions = array<i32: 1>} : vector<1x128xi32>
    %c64_i32 = arith.constant 64 : i32
    %12 = vector.broadcast %c64_i32 : i32 to vector<1x128xi32>
    %13 = arith.cmpi sge, %11, %12 : vector<1x128xi32>
    %c96_i32 = arith.constant 96 : i32
    %14 = vector.broadcast %c96_i32 : i32 to vector<1x128xi32>
    %15 = arith.cmpi slt, %11, %14 : vector<1x128xi32>
    %16 = arith.andi %13, %15 : vector<1x128xi1>
    %cst_7 = arith.constant 1.000000e+00 : f32
    %cst_8 = arith.constant 5.000000e-01 : f32
    %17 = vector.broadcast %cst_7 : f32 to vector<1x128xf32>
    %18 = vector.broadcast %cst_8 : f32 to vector<1x128xf32>
    %19 = arith.select %16, %17, %18 : vector<1x128xi1>, vector<1x128xf32>
    %c0_9 = arith.constant 0 : index
    %c0_10 = arith.constant 0 : index
    %20 = vector.load %arg2[%c0_9, %c0_10] : memref<2x32xf32, #tpu.memory_space<vmem>>, vector<1x32xf32>
    %c1 = arith.constant 1 : index
    %c0_11 = arith.constant 0 : index
    %21 = vector.load %arg2[%c1, %c0_11] : memref<2x32xf32, #tpu.memory_space<vmem>>, vector<1x32xf32>
    %22 = vector.extract_strided_slice %10 {offsets = [0, 0], sizes = [1, 128], strides = [1, 1]} : vector<8x128xf32> to vector<1x128xf32>
    %cst_12 = arith.constant dense<0.000000e+00> : vector<1x128xf32>
    %23 = tpu.matmul %20, %1, %cst_12 {dimension_numbers = #tpu.dot_dimension_numbers<[1], [0], [0], [1], [0, 0, 1, 1], [], []>} : vector<1x32xf32>, vector<32x128xf32>, vector<1x128xf32> -> vector<1x128xf32>
    %24 = arith.addf %22, %23 : vector<1x128xf32>
    %25 = arith.mulf %24, %19 : vector<1x128xf32>
    %26 = math.tanh %25 : vector<1x128xf32>
    %27 = vector.extract_strided_slice %26 {offsets = [0, 0], sizes = [1, 32], strides = [1, 1]} : vector<1x128xf32> to vector<1x32xf32>
    %cst_13 = arith.constant 1.000000e+00 : f32
    %28 = vector.broadcast %cst_13 : f32 to vector<1x32xf32>
    %29 = arith.addf %28, %27 : vector<1x32xf32>
    %cst_14 = arith.constant 5.000000e-01 : f32
    %30 = vector.broadcast %cst_14 : f32 to vector<1x32xf32>
    %31 = arith.mulf %30, %29 : vector<1x32xf32>
    %32 = vector.extract_strided_slice %26 {offsets = [0, 32], sizes = [1, 32], strides = [1, 1]} : vector<1x128xf32> to vector<1x32xf32>
    %cst_15 = arith.constant 1.000000e+00 : f32
    %33 = vector.broadcast %cst_15 : f32 to vector<1x32xf32>
    %34 = arith.addf %33, %32 : vector<1x32xf32>
    %cst_16 = arith.constant 5.000000e-01 : f32
    %35 = vector.broadcast %cst_16 : f32 to vector<1x32xf32>
    %36 = arith.mulf %35, %34 : vector<1x32xf32>
    %37 = vector.extract_strided_slice %26 {offsets = [0, 64], sizes = [1, 32], strides = [1, 1]} : vector<1x128xf32> to vector<1x32xf32>
    %38 = vector.extract_strided_slice %26 {offsets = [0, 96], sizes = [1, 32], strides = [1, 1]} : vector<1x128xf32> to vector<1x32xf32>
    %cst_17 = arith.constant 1.000000e+00 : f32
    %39 = vector.broadcast %cst_17 : f32 to vector<1x32xf32>
    %40 = arith.addf %39, %38 : vector<1x32xf32>
    %cst_18 = arith.constant 5.000000e-01 : f32
    %41 = vector.broadcast %cst_18 : f32 to vector<1x32xf32>
    %42 = arith.mulf %41, %40 : vector<1x32xf32>
    %43 = arith.mulf %36, %21 : vector<1x32xf32>
    %44 = arith.mulf %31, %37 : vector<1x32xf32>
    %45 = arith.addf %43, %44 : vector<1x32xf32>
    %46 = math.tanh %45 : vector<1x32xf32>
    %47 = arith.mulf %42, %46 : vector<1x32xf32>
    %48 = vector.extract_strided_slice %10 {offsets = [1, 0], sizes = [1, 128], strides = [1, 1]} : vector<8x128xf32> to vector<1x128xf32>
    %cst_19 = arith.constant dense<0.000000e+00> : vector<1x128xf32>
    %49 = tpu.matmul %47, %1, %cst_19 {dimension_numbers = #tpu.dot_dimension_numbers<[1], [0], [0], [1], [0, 0, 1, 1], [], []>} : vector<1x32xf32>, vector<32x128xf32>, vector<1x128xf32> -> vector<1x128xf32>
    %50 = arith.addf %48, %49 : vector<1x128xf32>
    %51 = arith.mulf %50, %19 : vector<1x128xf32>
    %52 = math.tanh %51 : vector<1x128xf32>
    %53 = vector.extract_strided_slice %52 {offsets = [0, 0], sizes = [1, 32], strides = [1, 1]} : vector<1x128xf32> to vector<1x32xf32>
    %cst_20 = arith.constant 1.000000e+00 : f32
    %54 = vector.broadcast %cst_20 : f32 to vector<1x32xf32>
    %55 = arith.addf %54, %53 : vector<1x32xf32>
    %cst_21 = arith.constant 5.000000e-01 : f32
    %56 = vector.broadcast %cst_21 : f32 to vector<1x32xf32>
    %57 = arith.mulf %56, %55 : vector<1x32xf32>
    %58 = vector.extract_strided_slice %52 {offsets = [0, 32], sizes = [1, 32], strides = [1, 1]} : vector<1x128xf32> to vector<1x32xf32>
    %cst_22 = arith.constant 1.000000e+00 : f32
    %59 = vector.broadcast %cst_22 : f32 to vector<1x32xf32>
    %60 = arith.addf %59, %58 : vector<1x32xf32>
    %cst_23 = arith.constant 5.000000e-01 : f32
    %61 = vector.broadcast %cst_23 : f32 to vector<1x32xf32>
    %62 = arith.mulf %61, %60 : vector<1x32xf32>
    %63 = vector.extract_strided_slice %52 {offsets = [0, 64], sizes = [1, 32], strides = [1, 1]} : vector<1x128xf32> to vector<1x32xf32>
    %64 = vector.extract_strided_slice %52 {offsets = [0, 96], sizes = [1, 32], strides = [1, 1]} : vector<1x128xf32> to vector<1x32xf32>
    %cst_24 = arith.constant 1.000000e+00 : f32
    %65 = vector.broadcast %cst_24 : f32 to vector<1x32xf32>
    %66 = arith.addf %65, %64 : vector<1x32xf32>
    %cst_25 = arith.constant 5.000000e-01 : f32
    %67 = vector.broadcast %cst_25 : f32 to vector<1x32xf32>
    %68 = arith.mulf %67, %66 : vector<1x32xf32>
    %69 = arith.mulf %62, %45 : vector<1x32xf32>
    %70 = arith.mulf %57, %63 : vector<1x32xf32>
    %71 = arith.addf %69, %70 : vector<1x32xf32>
    %72 = math.tanh %71 : vector<1x32xf32>
    %73 = arith.mulf %68, %72 : vector<1x32xf32>
    %74 = vector.extract_strided_slice %10 {offsets = [2, 0], sizes = [1, 128], strides = [1, 1]} : vector<8x128xf32> to vector<1x128xf32>
    %cst_26 = arith.constant dense<0.000000e+00> : vector<1x128xf32>
    %75 = tpu.matmul %73, %1, %cst_26 {dimension_numbers = #tpu.dot_dimension_numbers<[1], [0], [0], [1], [0, 0, 1, 1], [], []>} : vector<1x32xf32>, vector<32x128xf32>, vector<1x128xf32> -> vector<1x128xf32>
    %76 = arith.addf %74, %75 : vector<1x128xf32>
    %77 = arith.mulf %76, %19 : vector<1x128xf32>
    %78 = math.tanh %77 : vector<1x128xf32>
    %79 = vector.extract_strided_slice %78 {offsets = [0, 0], sizes = [1, 32], strides = [1, 1]} : vector<1x128xf32> to vector<1x32xf32>
    %cst_27 = arith.constant 1.000000e+00 : f32
    %80 = vector.broadcast %cst_27 : f32 to vector<1x32xf32>
    %81 = arith.addf %80, %79 : vector<1x32xf32>
    %cst_28 = arith.constant 5.000000e-01 : f32
    %82 = vector.broadcast %cst_28 : f32 to vector<1x32xf32>
    %83 = arith.mulf %82, %81 : vector<1x32xf32>
    %84 = vector.extract_strided_slice %78 {offsets = [0, 32], sizes = [1, 32], strides = [1, 1]} : vector<1x128xf32> to vector<1x32xf32>
    %cst_29 = arith.constant 1.000000e+00 : f32
    %85 = vector.broadcast %cst_29 : f32 to vector<1x32xf32>
    %86 = arith.addf %85, %84 : vector<1x32xf32>
    %cst_30 = arith.constant 5.000000e-01 : f32
    %87 = vector.broadcast %cst_30 : f32 to vector<1x32xf32>
    %88 = arith.mulf %87, %86 : vector<1x32xf32>
    %89 = vector.extract_strided_slice %78 {offsets = [0, 64], sizes = [1, 32], strides = [1, 1]} : vector<1x128xf32> to vector<1x32xf32>
    %90 = vector.extract_strided_slice %78 {offsets = [0, 96], sizes = [1, 32], strides = [1, 1]} : vector<1x128xf32> to vector<1x32xf32>
    %cst_31 = arith.constant 1.000000e+00 : f32
    %91 = vector.broadcast %cst_31 : f32 to vector<1x32xf32>
    %92 = arith.addf %91, %90 : vector<1x32xf32>
    %cst_32 = arith.constant 5.000000e-01 : f32
    %93 = vector.broadcast %cst_32 : f32 to vector<1x32xf32>
    %94 = arith.mulf %93, %92 : vector<1x32xf32>
    %95 = arith.mulf %88, %71 : vector<1x32xf32>
    %96 = arith.mulf %83, %89 : vector<1x32xf32>
    %97 = arith.addf %95, %96 : vector<1x32xf32>
    %98 = math.tanh %97 : vector<1x32xf32>
    %99 = arith.mulf %94, %98 : vector<1x32xf32>
    %100 = vector.extract_strided_slice %10 {offsets = [3, 0], sizes = [1, 128], strides = [1, 1]} : vector<8x128xf32> to vector<1x128xf32>
    %cst_33 = arith.constant dense<0.000000e+00> : vector<1x128xf32>
    %101 = tpu.matmul %99, %1, %cst_33 {dimension_numbers = #tpu.dot_dimension_numbers<[1], [0], [0], [1], [0, 0, 1, 1], [], []>} : vector<1x32xf32>, vector<32x128xf32>, vector<1x128xf32> -> vector<1x128xf32>
    %102 = arith.addf %100, %101 : vector<1x128xf32>
    %103 = arith.mulf %102, %19 : vector<1x128xf32>
    %104 = math.tanh %103 : vector<1x128xf32>
    %105 = vector.extract_strided_slice %104 {offsets = [0, 0], sizes = [1, 32], strides = [1, 1]} : vector<1x128xf32> to vector<1x32xf32>
    %cst_34 = arith.constant 1.000000e+00 : f32
    %106 = vector.broadcast %cst_34 : f32 to vector<1x32xf32>
    %107 = arith.addf %106, %105 : vector<1x32xf32>
    %cst_35 = arith.constant 5.000000e-01 : f32
    %108 = vector.broadcast %cst_35 : f32 to vector<1x32xf32>
    %109 = arith.mulf %108, %107 : vector<1x32xf32>
    %110 = vector.extract_strided_slice %104 {offsets = [0, 32], sizes = [1, 32], strides = [1, 1]} : vector<1x128xf32> to vector<1x32xf32>
    %cst_36 = arith.constant 1.000000e+00 : f32
    %111 = vector.broadcast %cst_36 : f32 to vector<1x32xf32>
    %112 = arith.addf %111, %110 : vector<1x32xf32>
    %cst_37 = arith.constant 5.000000e-01 : f32
    %113 = vector.broadcast %cst_37 : f32 to vector<1x32xf32>
    %114 = arith.mulf %113, %112 : vector<1x32xf32>
    %115 = vector.extract_strided_slice %104 {offsets = [0, 64], sizes = [1, 32], strides = [1, 1]} : vector<1x128xf32> to vector<1x32xf32>
    %116 = vector.extract_strided_slice %104 {offsets = [0, 96], sizes = [1, 32], strides = [1, 1]} : vector<1x128xf32> to vector<1x32xf32>
    %cst_38 = arith.constant 1.000000e+00 : f32
    %117 = vector.broadcast %cst_38 : f32 to vector<1x32xf32>
    %118 = arith.addf %117, %116 : vector<1x32xf32>
    %cst_39 = arith.constant 5.000000e-01 : f32
    %119 = vector.broadcast %cst_39 : f32 to vector<1x32xf32>
    %120 = arith.mulf %119, %118 : vector<1x32xf32>
    %121 = arith.mulf %114, %97 : vector<1x32xf32>
    %122 = arith.mulf %109, %115 : vector<1x32xf32>
    %123 = arith.addf %121, %122 : vector<1x32xf32>
    %124 = math.tanh %123 : vector<1x32xf32>
    %125 = arith.mulf %120, %124 : vector<1x32xf32>
    %126 = vector.extract_strided_slice %10 {offsets = [4, 0], sizes = [1, 128], strides = [1, 1]} : vector<8x128xf32> to vector<1x128xf32>
    %cst_40 = arith.constant dense<0.000000e+00> : vector<1x128xf32>
    %127 = tpu.matmul %125, %1, %cst_40 {dimension_numbers = #tpu.dot_dimension_numbers<[1], [0], [0], [1], [0, 0, 1, 1], [], []>} : vector<1x32xf32>, vector<32x128xf32>, vector<1x128xf32> -> vector<1x128xf32>
    %128 = arith.addf %126, %127 : vector<1x128xf32>
    %129 = arith.mulf %128, %19 : vector<1x128xf32>
    %130 = math.tanh %129 : vector<1x128xf32>
    %131 = vector.extract_strided_slice %130 {offsets = [0, 0], sizes = [1, 32], strides = [1, 1]} : vector<1x128xf32> to vector<1x32xf32>
    %cst_41 = arith.constant 1.000000e+00 : f32
    %132 = vector.broadcast %cst_41 : f32 to vector<1x32xf32>
    %133 = arith.addf %132, %131 : vector<1x32xf32>
    %cst_42 = arith.constant 5.000000e-01 : f32
    %134 = vector.broadcast %cst_42 : f32 to vector<1x32xf32>
    %135 = arith.mulf %134, %133 : vector<1x32xf32>
    %136 = vector.extract_strided_slice %130 {offsets = [0, 32], sizes = [1, 32], strides = [1, 1]} : vector<1x128xf32> to vector<1x32xf32>
    %cst_43 = arith.constant 1.000000e+00 : f32
    %137 = vector.broadcast %cst_43 : f32 to vector<1x32xf32>
    %138 = arith.addf %137, %136 : vector<1x32xf32>
    %cst_44 = arith.constant 5.000000e-01 : f32
    %139 = vector.broadcast %cst_44 : f32 to vector<1x32xf32>
    %140 = arith.mulf %139, %138 : vector<1x32xf32>
    %141 = vector.extract_strided_slice %130 {offsets = [0, 64], sizes = [1, 32], strides = [1, 1]} : vector<1x128xf32> to vector<1x32xf32>
    %142 = vector.extract_strided_slice %130 {offsets = [0, 96], sizes = [1, 32], strides = [1, 1]} : vector<1x128xf32> to vector<1x32xf32>
    %cst_45 = arith.constant 1.000000e+00 : f32
    %143 = vector.broadcast %cst_45 : f32 to vector<1x32xf32>
    %144 = arith.addf %143, %142 : vector<1x32xf32>
    %cst_46 = arith.constant 5.000000e-01 : f32
    %145 = vector.broadcast %cst_46 : f32 to vector<1x32xf32>
    %146 = arith.mulf %145, %144 : vector<1x32xf32>
    %147 = arith.mulf %140, %123 : vector<1x32xf32>
    %148 = arith.mulf %135, %141 : vector<1x32xf32>
    %149 = arith.addf %147, %148 : vector<1x32xf32>
    %150 = math.tanh %149 : vector<1x32xf32>
    %151 = arith.mulf %146, %150 : vector<1x32xf32>
    %152 = vector.extract_strided_slice %10 {offsets = [5, 0], sizes = [1, 128], strides = [1, 1]} : vector<8x128xf32> to vector<1x128xf32>
    %cst_47 = arith.constant dense<0.000000e+00> : vector<1x128xf32>
    %153 = tpu.matmul %151, %1, %cst_47 {dimension_numbers = #tpu.dot_dimension_numbers<[1], [0], [0], [1], [0, 0, 1, 1], [], []>} : vector<1x32xf32>, vector<32x128xf32>, vector<1x128xf32> -> vector<1x128xf32>
    %154 = arith.addf %152, %153 : vector<1x128xf32>
    %155 = arith.mulf %154, %19 : vector<1x128xf32>
    %156 = math.tanh %155 : vector<1x128xf32>
    %157 = vector.extract_strided_slice %156 {offsets = [0, 0], sizes = [1, 32], strides = [1, 1]} : vector<1x128xf32> to vector<1x32xf32>
    %cst_48 = arith.constant 1.000000e+00 : f32
    %158 = vector.broadcast %cst_48 : f32 to vector<1x32xf32>
    %159 = arith.addf %158, %157 : vector<1x32xf32>
    %cst_49 = arith.constant 5.000000e-01 : f32
    %160 = vector.broadcast %cst_49 : f32 to vector<1x32xf32>
    %161 = arith.mulf %160, %159 : vector<1x32xf32>
    %162 = vector.extract_strided_slice %156 {offsets = [0, 32], sizes = [1, 32], strides = [1, 1]} : vector<1x128xf32> to vector<1x32xf32>
    %cst_50 = arith.constant 1.000000e+00 : f32
    %163 = vector.broadcast %cst_50 : f32 to vector<1x32xf32>
    %164 = arith.addf %163, %162 : vector<1x32xf32>
    %cst_51 = arith.constant 5.000000e-01 : f32
    %165 = vector.broadcast %cst_51 : f32 to vector<1x32xf32>
    %166 = arith.mulf %165, %164 : vector<1x32xf32>
    %167 = vector.extract_strided_slice %156 {offsets = [0, 64], sizes = [1, 32], strides = [1, 1]} : vector<1x128xf32> to vector<1x32xf32>
    %168 = vector.extract_strided_slice %156 {offsets = [0, 96], sizes = [1, 32], strides = [1, 1]} : vector<1x128xf32> to vector<1x32xf32>
    %cst_52 = arith.constant 1.000000e+00 : f32
    %169 = vector.broadcast %cst_52 : f32 to vector<1x32xf32>
    %170 = arith.addf %169, %168 : vector<1x32xf32>
    %cst_53 = arith.constant 5.000000e-01 : f32
    %171 = vector.broadcast %cst_53 : f32 to vector<1x32xf32>
    %172 = arith.mulf %171, %170 : vector<1x32xf32>
    %173 = arith.mulf %166, %149 : vector<1x32xf32>
    %174 = arith.mulf %161, %167 : vector<1x32xf32>
    %175 = arith.addf %173, %174 : vector<1x32xf32>
    %176 = math.tanh %175 : vector<1x32xf32>
    %177 = arith.mulf %172, %176 : vector<1x32xf32>
    %178 = vector.extract_strided_slice %10 {offsets = [6, 0], sizes = [1, 128], strides = [1, 1]} : vector<8x128xf32> to vector<1x128xf32>
    %cst_54 = arith.constant dense<0.000000e+00> : vector<1x128xf32>
    %179 = tpu.matmul %177, %1, %cst_54 {dimension_numbers = #tpu.dot_dimension_numbers<[1], [0], [0], [1], [0, 0, 1, 1], [], []>} : vector<1x32xf32>, vector<32x128xf32>, vector<1x128xf32> -> vector<1x128xf32>
    %180 = arith.addf %178, %179 : vector<1x128xf32>
    %181 = arith.mulf %180, %19 : vector<1x128xf32>
    %182 = math.tanh %181 : vector<1x128xf32>
    %183 = vector.extract_strided_slice %182 {offsets = [0, 0], sizes = [1, 32], strides = [1, 1]} : vector<1x128xf32> to vector<1x32xf32>
    %cst_55 = arith.constant 1.000000e+00 : f32
    %184 = vector.broadcast %cst_55 : f32 to vector<1x32xf32>
    %185 = arith.addf %184, %183 : vector<1x32xf32>
    %cst_56 = arith.constant 5.000000e-01 : f32
    %186 = vector.broadcast %cst_56 : f32 to vector<1x32xf32>
    %187 = arith.mulf %186, %185 : vector<1x32xf32>
    %188 = vector.extract_strided_slice %182 {offsets = [0, 32], sizes = [1, 32], strides = [1, 1]} : vector<1x128xf32> to vector<1x32xf32>
    %cst_57 = arith.constant 1.000000e+00 : f32
    %189 = vector.broadcast %cst_57 : f32 to vector<1x32xf32>
    %190 = arith.addf %189, %188 : vector<1x32xf32>
    %cst_58 = arith.constant 5.000000e-01 : f32
    %191 = vector.broadcast %cst_58 : f32 to vector<1x32xf32>
    %192 = arith.mulf %191, %190 : vector<1x32xf32>
    %193 = vector.extract_strided_slice %182 {offsets = [0, 64], sizes = [1, 32], strides = [1, 1]} : vector<1x128xf32> to vector<1x32xf32>
    %194 = vector.extract_strided_slice %182 {offsets = [0, 96], sizes = [1, 32], strides = [1, 1]} : vector<1x128xf32> to vector<1x32xf32>
    %cst_59 = arith.constant 1.000000e+00 : f32
    %195 = vector.broadcast %cst_59 : f32 to vector<1x32xf32>
    %196 = arith.addf %195, %194 : vector<1x32xf32>
    %cst_60 = arith.constant 5.000000e-01 : f32
    %197 = vector.broadcast %cst_60 : f32 to vector<1x32xf32>
    %198 = arith.mulf %197, %196 : vector<1x32xf32>
    %199 = arith.mulf %192, %175 : vector<1x32xf32>
    %200 = arith.mulf %187, %193 : vector<1x32xf32>
    %201 = arith.addf %199, %200 : vector<1x32xf32>
    %202 = math.tanh %201 : vector<1x32xf32>
    %203 = arith.mulf %198, %202 : vector<1x32xf32>
    %204 = vector.extract_strided_slice %10 {offsets = [7, 0], sizes = [1, 128], strides = [1, 1]} : vector<8x128xf32> to vector<1x128xf32>
    %cst_61 = arith.constant dense<0.000000e+00> : vector<1x128xf32>
    %205 = tpu.matmul %203, %1, %cst_61 {dimension_numbers = #tpu.dot_dimension_numbers<[1], [0], [0], [1], [0, 0, 1, 1], [], []>} : vector<1x32xf32>, vector<32x128xf32>, vector<1x128xf32> -> vector<1x128xf32>
    %206 = arith.addf %204, %205 : vector<1x128xf32>
    %207 = arith.mulf %206, %19 : vector<1x128xf32>
    %208 = math.tanh %207 : vector<1x128xf32>
    %209 = vector.extract_strided_slice %208 {offsets = [0, 0], sizes = [1, 32], strides = [1, 1]} : vector<1x128xf32> to vector<1x32xf32>
    %cst_62 = arith.constant 1.000000e+00 : f32
    %210 = vector.broadcast %cst_62 : f32 to vector<1x32xf32>
    %211 = arith.addf %210, %209 : vector<1x32xf32>
    %cst_63 = arith.constant 5.000000e-01 : f32
    %212 = vector.broadcast %cst_63 : f32 to vector<1x32xf32>
    %213 = arith.mulf %212, %211 : vector<1x32xf32>
    %214 = vector.extract_strided_slice %208 {offsets = [0, 32], sizes = [1, 32], strides = [1, 1]} : vector<1x128xf32> to vector<1x32xf32>
    %cst_64 = arith.constant 1.000000e+00 : f32
    %215 = vector.broadcast %cst_64 : f32 to vector<1x32xf32>
    %216 = arith.addf %215, %214 : vector<1x32xf32>
    %cst_65 = arith.constant 5.000000e-01 : f32
    %217 = vector.broadcast %cst_65 : f32 to vector<1x32xf32>
    %218 = arith.mulf %217, %216 : vector<1x32xf32>
    %219 = vector.extract_strided_slice %208 {offsets = [0, 64], sizes = [1, 32], strides = [1, 1]} : vector<1x128xf32> to vector<1x32xf32>
    %220 = vector.extract_strided_slice %208 {offsets = [0, 96], sizes = [1, 32], strides = [1, 1]} : vector<1x128xf32> to vector<1x32xf32>
    %cst_66 = arith.constant 1.000000e+00 : f32
    %221 = vector.broadcast %cst_66 : f32 to vector<1x32xf32>
    %222 = arith.addf %221, %220 : vector<1x32xf32>
    %cst_67 = arith.constant 5.000000e-01 : f32
    %223 = vector.broadcast %cst_67 : f32 to vector<1x32xf32>
    %224 = arith.mulf %223, %222 : vector<1x32xf32>
    %225 = arith.mulf %218, %201 : vector<1x32xf32>
    %226 = arith.mulf %213, %219 : vector<1x32xf32>
    %227 = arith.addf %225, %226 : vector<1x32xf32>
    %228 = math.tanh %227 : vector<1x32xf32>
    %229 = arith.mulf %224, %228 : vector<1x32xf32>
    %230 = tpu.concatenate %47, %73, %99, %125, %151, %177, %203, %229 in 0 : vector<1x32xf32>, vector<1x32xf32>, vector<1x32xf32>, vector<1x32xf32>, vector<1x32xf32>, vector<1x32xf32>, vector<1x32xf32>, vector<1x32xf32> -> vector<8x32xf32>
    %231 = vector.broadcast %4 : vector<1x32xf32> to vector<8x32xf32>
    %232 = arith.mulf %230, %231 : vector<8x32xf32>
    %cst_68 = arith.constant dense<0.000000e+00> : vector<8xf32>
    %233 = vector.multi_reduction <add>, %232, %cst_68 [1] : vector<8x32xf32> to vector<8xf32>
    %234 = vector.shape_cast %233 : vector<8xf32> to vector<8x1xf32>
    %235 = vector.broadcast %6 : vector<1x1xf32> to vector<8x1xf32>
    %236 = arith.addf %234, %235 : vector<8x1xf32>
    %c0_69 = arith.constant 0 : index
    %c0_70 = arith.constant 0 : index
    %237 = vector.load %arg3[%c0_69, %c0_70] : memref<8x1xf32, #tpu.memory_space<vmem>>, vector<8x1xf32>
    tpu.vector_store %arg3[%c0_69, %c0_70], %236 {strides = array<i32>} : memref<8x1xf32, #tpu.memory_space<vmem>>, vector<8x1xf32>,
    %238 = tpu.concatenate %229, %227 in 0 : vector<1x32xf32>, vector<1x32xf32> -> vector<2x32xf32>
    %c0_71 = arith.constant 0 : index
    %c0_72 = arith.constant 0 : index
    %239 = vector.load %arg4[%c0_71, %c0_72] : memref<2x32xf32, #tpu.memory_space<vmem>>, vector<2x32xf32>
    tpu.vector_store %arg4[%c0_71, %c0_72], %238 {strides = array<i32>} : memref<2x32xf32, #tpu.memory_space<vmem>>, vector<2x32xf32>,
    return
  }
}

</mosaic_0001>

<bundles_post_ra>
// kernel: tpu_custom_call.1
= control target key start
LH: loop header
LB: loop body
LE: loop exit
PB: predicated region body
PF: predicated region fallthrough
CT: control target
= control target key end

     0   :  { %10 = vsyncpa [#allocation3], 0  ;;  %s1513_s0 = inlined_call_operand.vmem [shape: f32[8,4], index: 0, kind: input, shape index: {}]   ;;  %s1514_s1 = inlined_call_operand.hbm [shape: f32[64,128], index: 1, kind: input, shape index: {}]   ;;  %s1515_s2 = inlined_call_operand.vmem [shape: f32[2,32], index: 2, kind: input, shape index: {}]   ;;  %s1516_s3 = inlined_call_operand.vmem [shape: f32[8,1], index: 3, kind: output, shape index: {0}]   ;;  %s1517_s4 = inlined_call_operand.hbm [shape: f32[2,32], index: 4, kind: output, shape index: {1}]  }
   0x1   :  { %11 = vsyncpa [#allocation4], 0  ;;  %s1314_s15 = smov [#allocation2]   ;;  %s1266_s19 = scalar_lea.hbm %s1514_s1, 1024 }
   0x2   :  { %s19_s16 = sshll.u32 %s1314_s15, 4  ;;  %p1267_p0 = scmp.ne.s32.totalorder %s1514_s1, %s1266_s19  ;;  %s20_s16 = int_to_ptr.vmem [resolvable:$true] %s19_s16 }
   0x3   :  { %p1270_p1 = scmp.lt.u32.totalorder %s1266_s19, %s1514_s1 }
   0x5   :  { %p1272_p2 = pnand %p1270_p1, %p1267_p0 }
   0x7   :  { %1275 = shalt.err (!%p1272_p2)
}
   0x8   :  { %s1276_s24 = scalar_lea.vmem %s20_s16, 1024  ;;  %p1281_p4 = scmp.lt.s32.totalorder %s20_s16, %s20_s16 }
   0x9   :  { %p1277_p3 = scmp.ne.s32.totalorder %s20_s16, %s1276_s24  ;;  %p1282_p5 = scmp.lt.s32.totalorder %s1276_s24, %s1276_s24 }
   0xb   :  { %p1283_p6 = por %p1282_p5, %p1281_p4 }
   0xd   :  { %p1284_p7 = pnand %p1283_p6, %p1277_p3 }
   0xf   :  { %1287 = shalt.err (!%p1284_p7)
}
  0x10   :  { %s1315_s25 = smov 128   ;;  %s1316_s26 = smov 8  }
  0x11   :  { %25 = dma.hbm_to_vmem [thread:$0]  %s1514_s1, 1024, %s20_s16, [#allocation3], %s1315_s25, %s1315_s25, %s1316_s26  }
  0x12   :  { %1310 = dma.done.wait [#allocation3], 1024  }
  0x13   :  { %1311 = vsyncadd [#allocation3], 4294966272  ;;  %v1317_v0 = vmov 0.0|0.0   ;;  %v1318_v1 = vmov 0.0   ;;  %vm1319_vm0 = vmmov 0   ;;  %vm48_vm1 = vcmask 1043456  }
  0x14   :  { %1175 = vmatprep.subr.bf16.mxu1 %v1317_v0  ;;  %1082 = vmatprep.subr.mxu0 %v1318_v1  ;;  %vm44_vm2 = vcmask 31744   ;;  %v32_v2 = vld [vmem:[#allocation2 + $0x8] sm:$0xff]  ;;  %v33_v3 = vld [vmem:[#allocation2 + $0x10] sm:$0xff]  ;;  %v31_v4 = vld [vmem:[#allocation2] sm:$0xf]  ;;  %vm130_vm3 = vcmask 261120   ;;  %v122_v11 = vlaneseq }
  0x15   :  { %1084 = vmatprep.mubr.msk.f32.mxu0 %vm1319_vm0, %v1318_v1  ;;  %1095 = vmatprep.mubr.msk.f32.mxu1 %vm1319_vm0, %v1318_v1  ;;  %v1368_v5 = vpack.c.bf16 %v33_v3, %v32_v2  ;;  %v39_v6 = vld [vmem:[%s1513_s0] sm:$0xff]  ;;  %v34_v7 = vld [vmem:[#allocation2 + $0x18] sm:$0xff]  ;;  %v1027_v15 = vld [vmem:[#allocation2 + $0x28] ss:$0 sm:$0xff]  ;;  %v1320_v17 = vmov 0.5   ;;  %s1321_s5 = smov 64  }
  0x16   :  { %1083 = vmatpush3.msk.msra.mxu0 %vm48_vm1, %v31_v4  ;;  %v35_v8 = vld [vmem:[#allocation2 + $0x20] sm:$0xff]  ;;  %v123_v12 = vand.u32 127, %v122_v11  ;;  %s1322_s8 = smov 32   ;;  %vm957_vm7 = vcmask 1040384   ;;  %vm959_vm8 = vcmask 1041408   ;;  %vm961_vm9 = vcmask 1042432  }
  0x17   :  { %1085 = vmatmul.mubr.msk.f32.vlgmr.msra.gmra.mrb[0].mxu0 %vm44_vm2, %v39_v6  ;;  %1181 = vmatprep.subr.bf16.mxu0 %v1317_v0  ;;  %v1376_v9 = vpack.c.bf16 %v35_v8, %v34_v7  ;;  %v128_v10 = vld [vmem:[%s1515_s2] sm:$0x1]  ;;  %v129_v24 = vld [vmem:[%s1515_s2 + $0x1] sm:$0x1]  ;;  %vm964_vm10 = vcmask 1044480   ;;  %vm966_vm11 = vcmask 1045504  }
  0x18   :  { %1177 = vmatpush3.bf16.msra.mxu1 %v1368_v5  ;;  %1183 = vmatpush3.bf16.msra.mxu0 %v1368_v5  ;;  %vm124_vm4 = vcmp.ge.s32.totalorder %v123_v12, 64  ;;  %vm125_vm5 = vcmp.lt.s32.totalorder %v123_v12, 96  ;;  %s1323_s2 = smov 96   ;;  %vm968_vm12 = vcmask 1046528   ;;  %vm1006_vm13 = vcmask 254976   ;;  %s1324_s9 = smov [#allocation5]  }
  0x19   :  { %1178 = vmatprep.subr.bf16.mxu1 %v1317_v0  ;;  %1184 = vmatprep.subr.bf16.mxu0 %v1317_v0  ;;  %vm126_vm6 = vmand %vm124_vm4, %vm125_vm5  ;;  %s1016_s10 = sshll.u32 %s1324_s9, 4  ;;  %s1017_s10 = int_to_ptr.vmem [resolvable:$true] %s1016_s10 }
  0x1a   :  { %1106 = vmatprep.mubr.msk.f32.mxu0 %vm1319_vm0, %v1318_v1  ;;  %v1399_v18 = vsel %vm126_vm6, 1.0, %v1320_v17  ;;  %s1288_s11 = scalar_lea.vmem %s1017_s10, 32  ;;  %p1293_p9 = scmp.lt.s32.totalorder %s1017_s10, %s1017_s10 }
  0x1b   :  { %p1289_p8 = scmp.ne.s32.totalorder %s1017_s10, %s1288_s11  ;;  %p1294_p10 = scmp.lt.s32.totalorder %s1288_s11, %s1288_s11 }
  0x1c   :  { %1180 = vmatpush3.bf16.msra.mxu1 %v1376_v9  ;;  %1186 = vmatpush3.bf16.msra.mxu0 %v1376_v9 }
  0x1d   :  { %1187 = vmatprep.subr.bf16.mxu1 %v1317_v0  ;;  %1193 = vmatprep.subr.bf16.mxu0 %v1317_v0  ;;  %p1295_p11 = por %p1294_p10, %p1293_p9 }
  0x1f   :  { %1096 = vmatmul.mubr.msk.f32.vlgmr.msra.gmra.mrb[0].mxu1 %vm130_vm3, %v128_v10  ;;  %p1296_p12 = pnand %p1295_p11, %p1289_p8 }
  0x20   :  { %1189 = vmatpush3.bf16.msra.mxu1 %v1368_v5  ;;  %1117 = vmatprep.mubr.msk.f32.mxu1 %vm1319_vm0, %v1318_v1 }
  0x21   :  { %1190 = vmatprep.subr.bf16.mxu1 %v1317_v0 }
  0x24   :  { %1192 = vmatpush3.bf16.msra.mxu1 %v1376_v9 }
  0x25   :  { %1199 = vmatprep.subr.bf16.mxu1 %v1317_v0 }
  0xea   :  { %v118_v13 = vpop.f32.mrb[0].mxu0 }
  0xeb   :  { %v1086_v14 = vpop.f32.mrb[1].mxu0  ;;  %v1397_v16 = vadd.f32 %v1027_v15, %v118_v13 }
  0xf2   :  { %v200_v19 = vpop.f32.mrb[0].mxu1 }
  0xf3   :  { %v204_v20 = vadd.f32 %v200_v19, %v1397_v16  ;;  %v1097_v21 = vpop.f32.mrb[1].mxu1 }
  0xf5   :  { %v205_v22 = vmul.f32 %v204_v20, %v1399_v18 }
  0xf7   :  { %1234 = vtanh.f32 %v205_v22 }
 0x101   :  { %v1235_v23 = vpop.eup %1234 }
 0x102   :  { %215 = vrot.lane.b32.xlu0 %v1235_v23, %s1321_s5  ;;  %v207_v25 = vadd.f32 1.0, %v1235_v23 }
 0x104   :  { %v208_v26 = vmul.f32 0.5, %v207_v25 }
 0x106   :  { %210 = vrot.lane.b32.xlu0 %v129_v24, %s1322_s8 }
 0x174   :  { %v216_v27 = vpop.permute.xlu0 %215 }
 0x175   :  { %v218_v28 = vmul.f32 %v216_v27, %v208_v26 }
 0x177   :  { %220 = vrot.lane.b32.xlu1 %v218_v28, %s1322_s8 }
 0x178   :  { %v211_v29 = vpop.permute.xlu0 %210 }
 0x179   :  { %v213_v30 = vmul.f32 %v211_v29, %v208_v26 }
 0x1e9   :  { %v221_v31 = vpop.permute.xlu1 %220 }
 0x1ea   :  { %v223_v32 = vadd.f32 %v221_v31, %v213_v30 }
 0x1ec   :  { %1236 = vtanh.f32 %v223_v32  ;;  %v314_v47 = vrot.slane %v223_v32, 7 }
 0x1f6   :  { %v1237_v33 = vpop.eup %1236 }
 0x1f7   :  { %226 = vrot.lane.b32.xlu1 %v1237_v33, %s1321_s5 }
 0x269   :  { %v227_v34 = vpop.permute.xlu1 %226 }
 0x26a   :  { %v1410_v35 = vmul.f32 %v227_v34, %v208_v26 }
 0x26c   :  { %231 = vrot.lane.b32.xlu0 %v1410_v35, %s1322_s8 }
 0x2de   :  { %v232_v36 = vpop.permute.xlu0 %231 }
 0x2df   :  { %1107 = vmatmul.mubr.msk.f32.vlgmr.msra.gmra.mrb[2].mxu0 %vm130_vm3, %v232_v36 }
 0x2e0   :  { %1195 = vmatpush3.bf16.msra.mxu0 %v1368_v5  ;;  %1128 = vmatprep.mubr.msk.f32.mxu0 %vm1319_vm0, %v1318_v1 }
 0x2e1   :  { %1196 = vmatprep.subr.bf16.mxu0 %v1317_v0 }
 0x2e4   :  { %1198 = vmatpush3.bf16.msra.mxu0 %v1376_v9 }
 0x2e5   :  { %1205 = vmatprep.subr.bf16.mxu0 %v1317_v0 }
 0x3b2   :  { %v301_v37 = vpop.f32.mrb[2].mxu0 }
 0x3b3   :  { %v306_v38 = vrot.slane %v301_v37, 7  ;;  %v1108_v39 = vpop.f32.mrb[3].mxu0 }
 0x3b5   :  { %v308_v40 = vadd.f32 %v306_v38, %v1397_v16 }
 0x3b7   :  { %v309_v41 = vmul.f32 %v308_v40, %v1399_v18 }
 0x3b9   :  { %1238 = vtanh.f32 %v309_v41 }
 0x3c3   :  { %v1239_v42 = vpop.eup %1238 }
 0x3c4   :  { %318 = vrot.lane.b32.xlu1 %v1239_v42, %s1321_s5  ;;  %v311_v43 = vadd.f32 1.0, %v1239_v42 }
 0x3c6   :  { %v312_v44 = vmul.f32 0.5, %v311_v43 }
 0x3c8   :  { %v316_v48 = vmul.f32 %v314_v47, %v312_v44 }
 0x436   :  { %v319_v45 = vpop.permute.xlu1 %318 }
 0x437   :  { %v321_v46 = vmul.f32 %v319_v45, %v312_v44 }
 0x439   :  { %323 = vrot.lane.b32.xlu0 %v321_v46, %s1322_s8 }
 0x4ab   :  { %v324_v49 = vpop.permute.xlu0 %323 }
 0x4ac   :  { %v326_v50 = vadd.f32 %v324_v49, %v316_v48 }
 0x4ae   :  { %1240 = vtanh.f32 %v326_v50  ;;  %v418_v4 = vrot.slane %v326_v50, 7 }
 0x4b8   :  { %v1241_v51 = vpop.eup %1240 }
 0x4b9   :  { %329 = vrot.lane.b32.xlu1 %v1241_v51, %s1321_s5 }
 0x52b   :  { %v330_v52 = vpop.permute.xlu1 %329 }
 0x52c   :  { %v332_v53 = vmul.f32 %v330_v52, %v312_v44 }
 0x52e   :  { %v334_v54 = vrot.slane %v332_v53, 1  ;;  %v958_v13 = vsel %vm957_vm7, %v1410_v35, %v332_v53 }
 0x530   :  { %335 = vrot.lane.b32.xlu0 %v334_v54, %s1322_s8 }
 0x5a2   :  { %v336_v55 = vpop.permute.xlu0 %335 }
 0x5a3   :  { %1118 = vmatmul.mubr.msk.f32.vlgmr.msra.gmra.mrb[2].mxu1 %vm130_vm3, %v336_v55 }
 0x5a4   :  { %1201 = vmatpush3.bf16.msra.mxu1 %v1368_v5  ;;  %1139 = vmatprep.mubr.msk.f32.mxu1 %vm1319_vm0, %v1318_v1 }
 0x5a5   :  { %1202 = vmatprep.subr.bf16.mxu1 %v1317_v0 }
 0x5a8   :  { %1204 = vmatpush3.bf16.msra.mxu1 %v1376_v9 }
 0x5a9   :  { %1211 = vmatprep.subr.bf16.mxu1 %v1317_v0 }
 0x676   :  { %v405_v56 = vpop.f32.mrb[2].mxu1 }
 0x677   :  { %v410_v57 = vrot.slane %v405_v56, 6  ;;  %v1119_v58 = vpop.f32.mrb[3].mxu1 }
 0x679   :  { %v412_v59 = vadd.f32 %v410_v57, %v1397_v16 }
 0x67b   :  { %v413_v60 = vmul.f32 %v412_v59, %v1399_v18 }
 0x67d   :  { %1242 = vtanh.f32 %v413_v60 }
 0x687   :  { %v1243_v61 = vpop.eup %1242 }
 0x688   :  { %422 = vrot.lane.b32.xlu1 %v1243_v61, %s1321_s5  ;;  %v415_v62 = vadd.f32 1.0, %v1243_v61 }
 0x68a   :  { %v416_v63 = vmul.f32 0.5, %v415_v62 }
 0x68c   :  { %v420_v6 = vmul.f32 %v418_v4, %v416_v63 }
 0x6fa   :  { %v423_v2 = vpop.permute.xlu1 %422 }
 0x6fb   :  { %v425_v3 = vmul.f32 %v423_v2, %v416_v63 }
 0x6fd   :  { %427 = vrot.lane.b32.xlu0 %v425_v3, %s1322_s8 }
 0x76f   :  { %v428_v7 = vpop.permute.xlu0 %427 }
 0x770   :  { %v430_v8 = vadd.f32 %v428_v7, %v420_v6 }
 0x772   :  { %1244 = vtanh.f32 %v430_v8  ;;  %v522_v29 = vrot.slane %v430_v8, 7 }
 0x77c   :  { %v1245_v10 = vpop.eup %1244 }
 0x77d   :  { %433 = vrot.lane.b32.xlu1 %v1245_v10, %s1321_s5 }
 0x7ef   :  { %v434_v11 = vpop.permute.xlu1 %433 }
 0x7f0   :  { %v436_v12 = vmul.f32 %v434_v11, %v416_v63 }
 0x7f2   :  { %v438_v14 = vrot.slane %v436_v12, 2  ;;  %v960_v15 = vsel %vm959_vm8, %v958_v13, %v436_v12 }
 0x7f4   :  { %439 = vrot.lane.b32.xlu0 %v438_v14, %s1322_s8 }
 0x866   :  { %v440_v17 = vpop.permute.xlu0 %439 }
 0x867   :  { %1129 = vmatmul.mubr.msk.f32.vlgmr.msra.gmra.mrb[4].mxu0 %vm130_vm3, %v440_v17 }
 0x868   :  { %1207 = vmatpush3.bf16.msra.mxu0 %v1368_v5  ;;  %1150 = vmatprep.mubr.msk.f32.mxu0 %vm1319_vm0, %v1318_v1 }
 0x869   :  { %1208 = vmatprep.subr.bf16.mxu0 %v1317_v0 }
 0x86c   :  { %1210 = vmatpush3.bf16.msra.mxu0 %v1376_v9 }
 0x86d   :  { %1217 = vmatprep.subr.bf16.mxu0 %v1317_v0 }
 0x93a   :  { %v509_v19 = vpop.f32.mrb[4].mxu0 }
 0x93b   :  { %v514_v20 = vrot.slane %v509_v19, 5  ;;  %v1130_v21 = vpop.f32.mrb[5].mxu0 }
 0x93d   :  { %v516_v22 = vadd.f32 %v514_v20, %v1397_v16 }
 0x93f   :  { %v517_v23 = vmul.f32 %v516_v22, %v1399_v18 }
 0x941   :  { %1246 = vtanh.f32 %v517_v23 }
 0x94b   :  { %v1247_v24 = vpop.eup %1246 }
 0x94c   :  { %526 = vrot.lane.b32.xlu1 %v1247_v24, %s1321_s5  ;;  %v519_v25 = vadd.f32 1.0, %v1247_v24 }
 0x94e   :  { %v520_v26 = vmul.f32 0.5, %v519_v25 }
 0x950   :  { %v524_v30 = vmul.f32 %v522_v29, %v520_v26 }
 0x9be   :  { %v527_v27 = vpop.permute.xlu1 %526 }
 0x9bf   :  { %v529_v28 = vmul.f32 %v527_v27, %v520_v26 }
 0x9c1   :  { %531 = vrot.lane.b32.xlu0 %v529_v28, %s1322_s8 }
 0xa33   :  { %v532_v31 = vpop.permute.xlu0 %531 }
 0xa34   :  { %v534_v32 = vadd.f32 %v532_v31, %v524_v30 }
 0xa36   :  { %1248 = vtanh.f32 %v534_v32  ;;  %v626_v49 = vrot.slane %v534_v32, 7 }
 0xa40   :  { %v1249_v33 = vpop.eup %1248 }
 0xa41   :  { %537 = vrot.lane.b32.xlu1 %v1249_v33, %s1321_s5 }
 0xab3   :  { %v538_v34 = vpop.permute.xlu1 %537 }
 0xab4   :  { %v540_v35 = vmul.f32 %v538_v34, %v520_v26 }
 0xab6   :  { %v542_v36 = vrot.slane %v540_v35, 3  ;;  %v962_v37 = vsel %vm961_vm9, %v960_v15, %v540_v35 }
 0xab8   :  { %543 = vrot.lane.b32.xlu0 %v542_v36, %s1322_s8 }
 0xb2a   :  { %v544_v38 = vpop.permute.xlu0 %543 }
 0xb2b   :  { %1140 = vmatmul.mubr.msk.f32.vlgmr.msra.gmra.mrb[4].mxu1 %vm130_vm3, %v544_v38 }
 0xb2c   :  { %1213 = vmatpush3.bf16.msra.mxu1 %v1368_v5  ;;  %1161 = vmatprep.mubr.msk.f32.mxu1 %vm1319_vm0, %v1318_v1 }
 0xb2d   :  { %1214 = vmatprep.subr.bf16.mxu1 %v1317_v0 }
 0xb30   :  { %1216 = vmatpush3.bf16.msra.mxu1 %v1376_v9 }
 0xbfe   :  { %v613_v39 = vpop.f32.mrb[4].mxu1 }
 0xbff   :  { %v618_v40 = vrot.slane %v613_v39, 4  ;;  %v1141_v41 = vpop.f32.mrb[5].mxu1 }
 0xc01   :  { %v620_v42 = vadd.f32 %v618_v40, %v1397_v16 }
 0xc03   :  { %v621_v43 = vmul.f32 %v620_v42, %v1399_v18 }
 0xc05   :  { %1250 = vtanh.f32 %v621_v43 }
 0xc0f   :  { %v1251_v44 = vpop.eup %1250 }
 0xc10   :  { %630 = vrot.lane.b32.xlu1 %v1251_v44, %s1321_s5  ;;  %v623_v45 = vadd.f32 1.0, %v1251_v44 }
 0xc12   :  { %v624_v46 = vmul.f32 0.5, %v623_v45 }
 0xc14   :  { %v628_v50 = vmul.f32 %v626_v49, %v624_v46 }
 0xc82   :  { %v631_v47 = vpop.permute.xlu1 %630 }
 0xc83   :  { %v633_v48 = vmul.f32 %v631_v47, %v624_v46  ;;  %v1038_v47 = vld [vmem:[#allocation2 + $0x30] ss:$0 sm:$0xff] }
 0xc85   :  { %635 = vrot.lane.b32.xlu0 %v633_v48, %s1322_s8 }
 0xcf7   :  { %v636_v51 = vpop.permute.xlu0 %635 }
 0xcf8   :  { %v638_v52 = vadd.f32 %v636_v51, %v628_v50 }
 0xcfa   :  { %1252 = vtanh.f32 %v638_v52 }
 0xd04   :  { %v1253_v53 = vpop.eup %1252 }
 0xd05   :  { %641 = vrot.lane.b32.xlu1 %v1253_v53, %s1321_s5 }
 0xd77   :  { %v642_v54 = vpop.permute.xlu1 %641 }
 0xd78   :  { %v644_v55 = vmul.f32 %v642_v54, %v624_v46 }
 0xd7a   :  { %v646_v56 = vrot.slane %v644_v55, 4  ;;  %v963_v57 = vsel %vm48_vm1, %v962_v37, %v644_v55 }
 0xd7c   :  { %647 = vrot.lane.b32.xlu0 %v646_v56, %s1322_s8 }
 0xdee   :  { %v648_v58 = vpop.permute.xlu0 %647 }
 0xdef   :  { %1151 = vmatmul.mubr.msk.f32.vlgmr.msra.gmra.mrb[6].mxu0 %vm130_vm3, %v648_v58 }
 0xdf0   :  { %1219 = vmatpush3.bf16.msra.mxu0 %v1368_v5  ;;  %1172 = vmatprep.mubr.msk.f32.mxu0 %vm1319_vm0, %v1318_v1 }
 0xdf1   :  { %1220 = vmatprep.subr.bf16.mxu0 %v1317_v0  ;;  %v730_v0 = vrot.slane %v638_v52, 7 }
 0xdf4   :  { %1222 = vmatpush3.bf16.msra.mxu0 %v1376_v9 }
 0xec2   :  { %v717_v59 = vpop.f32.mrb[6].mxu0 }
 0xec3   :  { %v722_v60 = vrot.slane %v717_v59, 3  ;;  %v1152_v61 = vpop.f32.mrb[7].mxu0 }
 0xec5   :  { %v724_v62 = vadd.f32 %v722_v60, %v1397_v16 }
 0xec7   :  { %v725_v63 = vmul.f32 %v724_v62, %v1399_v18 }
 0xec9   :  { %1254 = vtanh.f32 %v725_v63 }
 0xed3   :  { %v1255_v2 = vpop.eup %1254 }
 0xed4   :  { %734 = vrot.lane.b32.xlu1 %v1255_v2, %s1321_s5  ;;  %v727_v3 = vadd.f32 1.0, %v1255_v2 }
 0xed6   :  { %v728_v5 = vmul.f32 0.5, %v727_v3 }
 0xed8   :  { %v732_v1 = vmul.f32 %v730_v0, %v728_v5 }
 0xf46   :  { %v735_v4 = vpop.permute.xlu1 %734 }
 0xf47   :  { %v737_v6 = vmul.f32 %v735_v4, %v728_v5 }
 0xf49   :  { %739 = vrot.lane.b32.xlu0 %v737_v6, %s1322_s8 }
 0xfbb   :  { %v740_v9 = vpop.permute.xlu0 %739 }
 0xfbc   :  { %v742_v7 = vadd.f32 %v740_v9, %v732_v1 }
 0xfbe   :  { %1256 = vtanh.f32 %v742_v7  ;;  %v834_v27 = vrot.slane %v742_v7, 7 }
 0xfc8   :  { %v1257_v8 = vpop.eup %1256 }
 0xfc9   :  { %745 = vrot.lane.b32.xlu1 %v1257_v8, %s1321_s5 }
0x103b   :  { %v746_v10 = vpop.permute.xlu1 %745 }
0x103c   :  { %v748_v11 = vmul.f32 %v746_v10, %v728_v5 }
0x103e   :  { %v750_v12 = vrot.slane %v748_v11, 5  ;;  %v965_v13 = vsel %vm964_vm10, %v963_v57, %v748_v11 }
0x1040   :  { %751 = vrot.lane.b32.xlu0 %v750_v12, %s1322_s8 }
0x10b2   :  { %v752_v14 = vpop.permute.xlu0 %751 }
0x10b3   :  { %1162 = vmatmul.mubr.msk.f32.vlgmr.msra.gmra.mrb[6].mxu1 %vm130_vm3, %v752_v14 }
0x1186   :  { %v821_v15 = vpop.f32.mrb[6].mxu1 }
0x1187   :  { %v826_v17 = vrot.slane %v821_v15, 2  ;;  %v1163_v19 = vpop.f32.mrb[7].mxu1 }
0x1189   :  { %v828_v20 = vadd.f32 %v826_v17, %v1397_v16 }
0x118b   :  { %v829_v21 = vmul.f32 %v828_v20, %v1399_v18 }
0x118d   :  { %1258 = vtanh.f32 %v829_v21 }
0x1197   :  { %v1259_v22 = vpop.eup %1258 }
0x1198   :  { %838 = vrot.lane.b32.xlu1 %v1259_v22, %s1321_s5  ;;  %v831_v23 = vadd.f32 1.0, %v1259_v22 }
0x119a   :  { %v832_v24 = vmul.f32 0.5, %v831_v23 }
0x119c   :  { %v836_v28 = vmul.f32 %v834_v27, %v832_v24 }
0x120a   :  { %v839_v25 = vpop.permute.xlu1 %838 }
0x120b   :  { %v841_v26 = vmul.f32 %v839_v25, %v832_v24 }
0x120d   :  { %843 = vrot.lane.b32.xlu0 %v841_v26, %s1322_s8 }
0x127f   :  { %v844_v29 = vpop.permute.xlu0 %843 }
0x1280   :  { %v846_v30 = vadd.f32 %v844_v29, %v836_v28 }
0x1282   :  { %1260 = vtanh.f32 %v846_v30  ;;  %v938_v48 = vrot.slane %v846_v30, 7 }
0x128c   :  { %v1261_v31 = vpop.eup %1260 }
0x128d   :  { %849 = vrot.lane.b32.xlu1 %v1261_v31, %s1321_s5 }
0x12ff   :  { %v850_v32 = vpop.permute.xlu1 %849 }
0x1300   :  { %v852_v33 = vmul.f32 %v850_v32, %v832_v24 }
0x1302   :  { %v854_v34 = vrot.slane %v852_v33, 6  ;;  %v967_v35 = vsel %vm966_vm11, %v965_v13, %v852_v33 }
0x1304   :  { %855 = vrot.lane.b32.xlu0 %v854_v34, %s1322_s8 }
0x1376   :  { %v856_v36 = vpop.permute.xlu0 %855 }
0x1377   :  { %1173 = vmatmul.mubr.msk.f32.vlgmr.msra.gmra.mrb[8].mxu0 %vm130_vm3, %v856_v36 }
0x144a   :  { %v925_v37 = vpop.f32.mrb[8].mxu0 }
0x144b   :  { %v930_v38 = vrot.slane %v925_v37, 1  ;;  %v1174_v39 = vpop.f32.mrb[9].mxu0 }
0x144d   :  { %v932_v40 = vadd.f32 %v930_v38, %v1397_v16 }
0x144f   :  { %v933_v41 = vmul.f32 %v932_v40, %v1399_v18 }
0x1451   :  { %1262 = vtanh.f32 %v933_v41 }
0x145b   :  { %v1263_v42 = vpop.eup %1262 }
0x145c   :  { %942 = vrot.lane.b32.xlu1 %v1263_v42, %s1321_s5  ;;  %v935_v43 = vadd.f32 1.0, %v1263_v42 }
0x145e   :  { %v936_v44 = vmul.f32 0.5, %v935_v43 }
0x1460   :  { %v940_v49 = vmul.f32 %v938_v48, %v936_v44 }
0x14ce   :  { %v943_v45 = vpop.permute.xlu1 %942 }
0x14cf   :  { %v945_v46 = vmul.f32 %v943_v45, %v936_v44 }
0x14d1   :  { %947 = vrot.lane.b32.xlu0 %v945_v46, %s1322_s8 }
0x14d5   :  { %975 = vrot.lane.b32.xlu0 %v1038_v47, %s1323_s2 }
0x1543   :  { %v948_v50 = vpop.permute.xlu0 %947 }
0x1544   :  { %v950_v51 = vadd.f32 %v948_v50, %v940_v49 }
0x1546   :  { %1264 = vtanh.f32 %v950_v51  ;;  %v997_v16 = vrot.slane %v950_v51, 6 }
0x1547   :  { %v976_v52 = vpop.permute.xlu0 %975 }
0x1548   :  { %998 = vrot.lane.b32.xlu0 %v997_v16, %s1321_s5 }
0x1550   :  { %v1265_v18 = vpop.eup %1264 }
0x1551   :  { %953 = vrot.lane.b32.xlu1 %v1265_v18, %s1321_s5 }
0x15ba   :  { %v999_v57 = vpop.permute.xlu0 %998 }
0x15c3   :  { %v954_v53 = vpop.permute.xlu1 %953 }
0x15c4   :  { %v956_v54 = vmul.f32 %v954_v53, %v936_v44 }
0x15c6   :  { %v994_v55 = vrot.slane %v956_v54, 7  ;;  %v969_v56 = vsel %vm968_vm12, %v967_v35, %v956_v54 }
0x15c7   :  { %v978_v58 = vmul.f32 %v976_v52, %v969_v56 }
0x15c8   :  { %v1001_v59 = vsel %vm957_vm7, %v994_v55, %v999_v57 }
0x15c9   :  { %1003 = vrot.lane.b32.xlu0 %v1001_v59, %s1322_s8  ;;  %980 = vrot.lane.b32.xlu1 %v978_v58, %s1322_s8 }
0x163b   :  { %v1004_v60 = vpop.permute.xlu0 %1003  ;;  %v981_v61 = vpop.permute.xlu1 %980 }
0x163c   :  { %v983_v62 = vsel %vm130_vm3, %v981_v61, 0.0  ;;  %1007 = vst.msk [vmem:[#allocation5] sm:$0x3] %vm1006_vm13, %v1004_v60 }
0x163d   :  { %984 = vadd.xlane.f32.xlu1 %v983_v62 }
0x163e   :  { %1299 = shalt.err (!%p1296_p12)
}
0x163f   :  { %s1300_s14 = scalar_lea.hbm %s1517_s4, 32 }
0x1640   :  { %p1301_p13 = scmp.ne.s32.totalorder %s1517_s4, %s1300_s14  ;;  %p1304_p0 = scmp.lt.u32.totalorder %s1300_s14, %s1517_s4 }
0x1642   :  { %p1306_p1 = pnand %p1304_p0, %p1301_p13 }
0x1644   :  { %1309 = shalt.err (!%p1306_p1)
}
0x1645   :  { %1019 = dma.vmem_to_hbm [thread:$0]  %s1017_s10, 32, %s1517_s4, [#allocation4]   ;;  %v1039_v63 = vld [vmem:[#allocation2 + $0x38] ss:$0 sm:$0xff]  ;;  %vm991_vm14 = vcmask 7168  }
0x16ca   :  { %v985_v2 = vpop.xlane.xlu1 %984 }
0x16cb   :  { %v990_v3 = vadd.f32 %v1039_v63, %v985_v2 }
0x16cd   :  { %992 = vst.msk [vmem:[%s1516_s3] sm:$0xff] %vm991_vm14, %v990_v3 }
0x16ce   :  { %1312 = dma.done.wait [#allocation4], 32  }
0x16cf   :  { %1313 = vsyncadd [#allocation4], 4294967264 }
0x16d0   :  { %1025 = vsyncpa [#allocation3], 1 }
0x16d1   :  { %1026 = vsyncpa [#allocation4], 1 }

</bundles_post_ra>
